<compile_context>
chip_gen: v5e
topology: v5e:2x2
jax: 0.10.0
libtpu: 0.0.40
codegen_flags: <defaults>
</compile_context>

<pallas_src>
import functools
import math

import jax
import jax.numpy as jnp
from jax.experimental import pallas as pl
from jax.experimental.pallas import tpu as pltpu

_LANES = 128


def _round_up(n, m):
    return (n + m - 1) // m * m


def _vae_kernel(layout, x_dim, z_dim, x_ref, eps_ref, p_ref, out_ref):
    """layout[i] = (w_row, in_dim, out_dim, b_row) static offsets into p_ref."""

    def linear(a, idx):
        wr, din, dout, br = layout[idx]
        w = p_ref[wr:wr + din, 0:dout]          # static slice of resident params
        b = p_ref[br:br + 1, 0:dout]            # (1, dout) bias, broadcasts over rows
        return jnp.dot(a, w, preferred_element_type=jnp.float32) + b

    x = x_ref[...]

    # ---- encoder ----
    h = jnp.maximum(linear(x, 0), 0.0)          # x_dim -> h0
    h = jnp.maximum(linear(h, 1), 0.0)          # h0    -> h1

    # ---- fused mu|sigma head ----
    musg = linear(h, 2)                         # h1 -> 2*z   (mu | sigma)
    mu = musg[:, :z_dim]
    sg = musg[:, z_dim:2 * z_dim]

    # ---- reparameterization ----
    z = mu + sg * eps_ref[...]

    # ---- decoder ----
    d = jnp.maximum(linear(z, 3), 0.0)          # z  -> h1
    d = jnp.maximum(linear(d, 4), 0.0)          # h1 -> h0
    xr = linear(d, 5)                           # h0 -> x_dim (no activation)

    # ---- single packed store: [xr | mu | sigma], true width (no dead pad lanes) ----
    out_ref[...] = jnp.concatenate([xr, musg], axis=1)


def pack_params(params):
    """Fuse mu/sigma heads and pack all weights+biases into one (rows, 128) buffer.

    Returns (buffer, layout) where layout[i] = (w_row, in_dim, out_dim, b_row).
    """
    (we1, be1), (we2, be2), (wmu, bmu), (wsg, bsg), (wd1, bd1), (wd2, bd2), (wd3, bd3) = params
    wmusg = jnp.concatenate([wmu, wsg], axis=1)
    bmusg = jnp.concatenate([bmu.reshape(1, -1), bsg.reshape(1, -1)], axis=1)
    layers = [(we1, be1), (we2, be2), (wmusg, bmusg), (wd1, bd1), (wd2, bd2), (wd3, bd3)]

    layout = []
    r = 0
    for w, b in layers:
        din, dout = w.shape
        assert dout <= _LANES, "layer wider than one lane tile not supported here"
        wr = r
        r += _round_up(din, 8)
        br = r
        r += 8
        layout.append((wr, din, dout, br))
    total_rows = _round_up(r, 8)

    buf = jnp.zeros((total_rows, _LANES), jnp.float32)
    for (wr, din, dout, br), (w, b) in zip(layout, layers):
        buf = buf.at[wr:wr + din, 0:dout].set(w.astype(jnp.float32))
        buf = buf.at[br:br + 1, 0:dout].set(b.reshape(1, dout).astype(jnp.float32))
    return buf, tuple(layout)


def vae_forward(x, eps, params, *, tb=8192):
    """params: list of (W_in_out, b_1_out) in layer order (see make_vae_params)."""
    B, x_dim = x.shape
    z_dim = eps.shape[-1]

    pbuf, layout = pack_params(params)

    # ---- batch tile selection ----
    # Per-row double-buffered VMEM cost: 2*(x_dim + z_dim + out_w)*4 ~= 1.2 KB, so
    # TB=8192 fits easily inside the 32 MiB scoped VMEM budget on v5e/v6e/v7x.
    # (v5e/v6e with 128 MiB physical VMEM could push TB/vmem_limit higher still.)
    Bp8 = _round_up(B, 8)
    TB = _round_up(max(8, min(tb, Bp8)), 8)
    # Split a large single-tile batch into >=2 grid steps so the "parallel" batch
    # axis can shard across both v7x TensorCores (harmless on 1-TC v5e/v6e).
    if TB >= Bp8 and Bp8 >= 1024:
        TB = _round_up(pl.cdiv(Bp8, 2), 8)

    Bp = _round_up(B, TB)
    if Bp != B:
        x = jnp.pad(x, ((0, Bp - B), (0, 0)))
        eps = jnp.pad(eps, ((0, Bp - B), (0, 0)))

    out_w = x_dim + 2 * z_dim                    # true packed width (80), no pad lanes
    grid = (Bp // TB,)

    kernel = functools.partial(_vae_kernel, layout, x_dim, z_dim)

    flops_per_row = 2 * sum(din * dout for _, din, dout, _ in layout)
    cost = pl.CostEstimate(
        flops=Bp * flops_per_row,
        transcendentals=0,
        bytes_accessed=Bp * (x_dim + z_dim + out_w) * 4 + pbuf.size * 4,
    )

    # TODO(synk): bf16 x/output + bf16 packed weights (f32 accumulation) would cut
    # HBM bytes ~2x; kept f32 here to preserve bit-level parity with the reference.
    out = pl.pallas_call(
        kernel,
        out_shape=jax.ShapeDtypeStruct((Bp, out_w), jnp.float32),
        grid=grid,
        in_specs=[
            pl.BlockSpec((TB, x_dim), lambda i: (i, 0)),     # batch-tiled x
            pl.BlockSpec((TB, z_dim), lambda i: (i, 0)),     # batch-tiled eps
            pl.BlockSpec(pbuf.shape, lambda i: (0, 0)),      # VMEM-resident packed params
        ],
        out_specs=pl.BlockSpec((TB, out_w), lambda i: (i, 0)),
        compiler_params=pltpu.CompilerParams(
            dimension_semantics=("parallel",),               # shard batch tiles across TCs
            vmem_limit_bytes=32 * 1024 * 1024,
        ),
        cost_estimate=cost,
    )(x, eps, pbuf)

    xr = out[:B, :x_dim]
    mu = out[:B, x_dim:x_dim + z_dim]
    sg = out[:B, x_dim + z_dim:x_dim + 2 * z_dim]
    return xr, mu, sg


def init_linear(key, fan_in, fan_out):
    """Deterministic PyTorch-style (Kaiming uniform-ish) init; W stored as (in, out)."""
    kw, kb = jax.random.split(key)
    bound = 1.0 / math.sqrt(fan_in)
    w = jax.random.uniform(kw, (fan_in, fan_out), jnp.float32, -bound, bound)
    b = jax.random.uniform(kb, (1, fan_out), jnp.float32, -bound, bound)
    return w, b


def make_vae_params(key, x_dim, h_dims, z_dim):
    h0, h1 = h_dims
    keys = jax.random.split(key, 7)
    return [
        init_linear(keys[0], x_dim, h0),  # encoder: input_to_hidden
        init_linear(keys[1], h0, h1),     # encoder: Linear(h0, h1)
        init_linear(keys[2], h1, z_dim),  # hidden_to_mu
        init_linear(keys[3], h1, z_dim),  # hidden_to_sigma
        init_linear(keys[4], z_dim, h1),  # decoder: z_to_hidden
        init_linear(keys[5], h1, h0),     # decoder: Linear(h1, h0)
        init_linear(keys[6], h0, x_dim),  # decoder: hidden_to_input
    ]


def vae_forward_ref(x, eps, params):
    (we1, be1), (we2, be2), (wmu, bmu), (wsg, bsg), (wd1, bd1), (wd2, bd2), (wd3, bd3) = params
    h = jax.nn.relu(x @ we1 + be1)
    h = jax.nn.relu(h @ we2 + be2)
    mu = h @ wmu + bmu
    sg = h @ wsg + bsg
    z = mu + sg * eps
    d = jax.nn.relu(z @ wd1 + bd1)
    d = jax.nn.relu(d @ wd2 + bd2)
    xr = d @ wd3 + bd3
    return xr, mu, sg


if __name__ == "__main__":
    x_dim, h_dims, z_dim = 64, [32, 16], 8

    key = jax.random.PRNGKey(0)
    k_x, k_eps, k_params, k_x2, k_eps2, k_x3, k_eps3 = jax.random.split(key, 7)
    params = make_vae_params(k_params, x_dim, h_dims, z_dim)

    # --- small-batch check (module-sized example) ---
    batch = 2
    x = jax.random.normal(k_x, (batch, x_dim), jnp.float32)
    eps = jax.random.normal(k_eps, (batch, z_dim), jnp.float32)  # randn_like(sigma)
    # TODO(synk): eps could be generated in-kernel (pltpu.prng_seed + stateful_normal);
    # it is passed explicitly to keep bit-exact parity with the external randn.

    xr, mu, sigma = vae_forward(x, eps, params)
    jax.block_until_ready((xr, mu, sigma))
    xr_r, mu_r, sg_r = vae_forward_ref(x, eps, params)
    assert jnp.allclose(xr, xr_r, atol=1e-5, rtol=1e-5)
    assert jnp.allclose(mu, mu_r, atol=1e-5, rtol=1e-5)
    assert jnp.allclose(sigma, sg_r, atol=1e-5, rtol=1e-5)

    # --- multi-tile check (grid > 1, batch not a multiple of the tile) ---
    batch2 = 300
    x2 = jax.random.normal(k_x2, (batch2, x_dim), jnp.float32)
    eps2 = jax.random.normal(k_eps2, (batch2, z_dim), jnp.float32)
    xr2, mu2, sg2 = vae_forward(x2, eps2, params, tb=128)
    jax.block_until_ready((xr2, mu2, sg2))
    xr2_r, mu2_r, sg2_r = vae_forward_ref(x2, eps2, params)
    assert jnp.allclose(xr2, xr2_r, atol=1e-5, rtol=1e-5)
    assert jnp.allclose(mu2, mu2_r, atol=1e-5, rtol=1e-5)
    assert jnp.allclose(sg2, sg2_r, atol=1e-5, rtol=1e-5)

    # --- large-batch check (default tb, exercises the >=2-step TC split path) ---
    batch3 = 3000
    x3 = jax.random.normal(k_x3, (batch3, x_dim), jnp.float32)
    eps3 = jax.random.normal(k_eps3, (batch3, z_dim), jnp.float32)
    xr3, mu3, sg3 = vae_forward(x3, eps3, params)
    jax.block_until_ready((xr3, mu3, sg3))
    xr3_r, mu3_r, sg3_r = vae_forward_ref(x3, eps3, params)
    assert jnp.allclose(xr3, xr3_r, atol=1e-5, rtol=1e-5)
    assert jnp.allclose(mu3, mu3_r, atol=1e-5, rtol=1e-5)
    assert jnp.allclose(sg3, sg3_r, atol=1e-5, rtol=1e-5)

    print("KERNEL_OK")
</pallas_src>

<mosaic_0001>
module attributes {stable_mosaic.version = 11 : i64} {
  func.func @_vae_kernel(%arg0: i32, %arg1: memref<8x64xf32, #tpu.memory_space<vmem>>, %arg2: memref<8x8xf32, #tpu.memory_space<vmem>>, %arg3: memref<216x128xf32, #tpu.memory_space<vmem>>, %arg4: memref<8x80xf32, #tpu.memory_space<vmem>>) attributes {dimension_semantics = [#tpu.dimension_semantics<parallel>], iteration_bounds = array<i64: 1>, scalar_prefetch = 0 : i64, scratch_operands = 0 : i64, tpu.core_type = #tpu.core_type<tc>, window_params = [{transform_indices = @transform_0, window_bounds = array<i64: 8, 64>}, {transform_indices = @transform_1, window_bounds = array<i64: 8, 8>}, {pipeline_mode = #tpu.pipeline_mode<synchronous>, transform_indices = @transform_2, window_bounds = array<i64: 216, 128>}, {transform_indices = @transform_3, window_bounds = array<i64: 8, 80>}]} {
    %c0 = arith.constant 0 : index
    %c0_0 = arith.constant 0 : index
    %0 = vector.load %arg1[%c0, %c0_0] : memref<8x64xf32, #tpu.memory_space<vmem>>, vector<8x64xf32>
    %c0_1 = arith.constant 0 : index
    %c0_2 = arith.constant 0 : index
    %1 = vector.load %arg3[%c0_1, %c0_2] : memref<216x128xf32, #tpu.memory_space<vmem>>, vector<64x32xf32>
    %c64 = arith.constant 64 : index
    %c0_3 = arith.constant 0 : index
    %2 = vector.load %arg3[%c64, %c0_3] : memref<216x128xf32, #tpu.memory_space<vmem>>, vector<1x32xf32>
    %cst = arith.constant dense<0.000000e+00> : vector<8x32xf32>
    %3 = tpu.matmul %0, %1, %cst {dimension_numbers = #tpu.dot_dimension_numbers<[1], [0], [0], [1], [0, 0, 1, 1], [], []>} : vector<8x64xf32>, vector<64x32xf32>, vector<8x32xf32> -> vector<8x32xf32>
    %4 = vector.broadcast %2 : vector<1x32xf32> to vector<8x32xf32>
    %5 = arith.addf %3, %4 : vector<8x32xf32>
    %cst_4 = arith.constant 0.000000e+00 : f32
    %6 = vector.broadcast %cst_4 : f32 to vector<8x32xf32>
    %7 = arith.maximumf %5, %6 : vector<8x32xf32>
    %c72 = arith.constant 72 : index
    %c0_5 = arith.constant 0 : index
    %8 = vector.load %arg3[%c72, %c0_5] : memref<216x128xf32, #tpu.memory_space<vmem>>, vector<32x16xf32>
    %c104 = arith.constant 104 : index
    %c0_6 = arith.constant 0 : index
    %9 = vector.load %arg3[%c104, %c0_6] : memref<216x128xf32, #tpu.memory_space<vmem>>, vector<1x16xf32>
    %cst_7 = arith.constant dense<0.000000e+00> : vector<8x16xf32>
    %10 = tpu.matmul %7, %8, %cst_7 {dimension_numbers = #tpu.dot_dimension_numbers<[1], [0], [0], [1], [0, 0, 1, 1], [], []>} : vector<8x32xf32>, vector<32x16xf32>, vector<8x16xf32> -> vector<8x16xf32>
    %11 = vector.broadcast %9 : vector<1x16xf32> to vector<8x16xf32>
    %12 = arith.addf %10, %11 : vector<8x16xf32>
    %cst_8 = arith.constant 0.000000e+00 : f32
    %13 = vector.broadcast %cst_8 : f32 to vector<8x16xf32>
    %14 = arith.maximumf %12, %13 : vector<8x16xf32>
    %c112 = arith.constant 112 : index
    %c0_9 = arith.constant 0 : index
    %15 = vector.load %arg3[%c112, %c0_9] : memref<216x128xf32, #tpu.memory_space<vmem>>, vector<16x16xf32>
    %c128 = arith.constant 128 : index
    %c0_10 = arith.constant 0 : index
    %16 = vector.load %arg3[%c128, %c0_10] : memref<216x128xf32, #tpu.memory_space<vmem>>, vector<1x16xf32>
    %cst_11 = arith.constant dense<0.000000e+00> : vector<8x16xf32>
    %17 = tpu.matmul %14, %15, %cst_11 {dimension_numbers = #tpu.dot_dimension_numbers<[1], [0], [0], [1], [0, 0, 1, 1], [], []>} : vector<8x16xf32>, vector<16x16xf32>, vector<8x16xf32> -> vector<8x16xf32>
    %18 = vector.broadcast %16 : vector<1x16xf32> to vector<8x16xf32>
    %19 = arith.addf %17, %18 : vector<8x16xf32>
    %20 = vector.extract_strided_slice %19 {offsets = [0, 0], sizes = [8, 8], strides = [1, 1]} : vector<8x16xf32> to vector<8x8xf32>
    %21 = vector.extract_strided_slice %19 {offsets = [0, 8], sizes = [8, 8], strides = [1, 1]} : vector<8x16xf32> to vector<8x8xf32>
    %c0_12 = arith.constant 0 : index
    %c0_13 = arith.constant 0 : index
    %22 = vector.load %arg2[%c0_12, %c0_13] : memref<8x8xf32, #tpu.memory_space<vmem>>, vector<8x8xf32>
    %23 = arith.mulf %21, %22 : vector<8x8xf32>
    %24 = arith.addf %20, %23 : vector<8x8xf32>
    %c136 = arith.constant 136 : index
    %c0_14 = arith.constant 0 : index
    %25 = vector.load %arg3[%c136, %c0_14] : memref<216x128xf32, #tpu.memory_space<vmem>>, vector<8x16xf32>
    %c144 = arith.constant 144 : index
    %c0_15 = arith.constant 0 : index
    %26 = vector.load %arg3[%c144, %c0_15] : memref<216x128xf32, #tpu.memory_space<vmem>>, vector<1x16xf32>
    %cst_16 = arith.constant dense<0.000000e+00> : vector<8x16xf32>
    %27 = tpu.matmul %24, %25, %cst_16 {dimension_numbers = #tpu.dot_dimension_numbers<[1], [0], [0], [1], [0, 0, 1, 1], [], []>} : vector<8x8xf32>, vector<8x16xf32>, vector<8x16xf32> -> vector<8x16xf32>
    %28 = vector.broadcast %26 : vector<1x16xf32> to vector<8x16xf32>
    %29 = arith.addf %27, %28 : vector<8x16xf32>
    %cst_17 = arith.constant 0.000000e+00 : f32
    %30 = vector.broadcast %cst_17 : f32 to vector<8x16xf32>
    %31 = arith.maximumf %29, %30 : vector<8x16xf32>
    %c152 = arith.constant 152 : index
    %c0_18 = arith.constant 0 : index
    %32 = vector.load %arg3[%c152, %c0_18] : memref<216x128xf32, #tpu.memory_space<vmem>>, vector<16x32xf32>
    %c168 = arith.constant 168 : index
    %c0_19 = arith.constant 0 : index
    %33 = vector.load %arg3[%c168, %c0_19] : memref<216x128xf32, #tpu.memory_space<vmem>>, vector<1x32xf32>
    %cst_20 = arith.constant dense<0.000000e+00> : vector<8x32xf32>
    %34 = tpu.matmul %31, %32, %cst_20 {dimension_numbers = #tpu.dot_dimension_numbers<[1], [0], [0], [1], [0, 0, 1, 1], [], []>} : vector<8x16xf32>, vector<16x32xf32>, vector<8x32xf32> -> vector<8x32xf32>
    %35 = vector.broadcast %33 : vector<1x32xf32> to vector<8x32xf32>
    %36 = arith.addf %34, %35 : vector<8x32xf32>
    %cst_21 = arith.constant 0.000000e+00 : f32
    %37 = vector.broadcast %cst_21 : f32 to vector<8x32xf32>
    %38 = arith.maximumf %36, %37 : vector<8x32xf32>
    %c176 = arith.constant 176 : index
    %c0_22 = arith.constant 0 : index
    %39 = vector.load %arg3[%c176, %c0_22] : memref<216x128xf32, #tpu.memory_space<vmem>>, vector<32x64xf32>
    %c208 = arith.constant 208 : index
    %c0_23 = arith.constant 0 : index
    %40 = vector.load %arg3[%c208, %c0_23] : memref<216x128xf32, #tpu.memory_space<vmem>>, vector<1x64xf32>
    %cst_24 = arith.constant dense<0.000000e+00> : vector<8x64xf32>
    %41 = tpu.matmul %38, %39, %cst_24 {dimension_numbers = #tpu.dot_dimension_numbers<[1], [0], [0], [1], [0, 0, 1, 1], [], []>} : vector<8x32xf32>, vector<32x64xf32>, vector<8x64xf32> -> vector<8x64xf32>
    %42 = vector.broadcast %40 : vector<1x64xf32> to vector<8x64xf32>
    %43 = arith.addf %41, %42 : vector<8x64xf32>
    %44 = tpu.concatenate %43, %19 in 1 : vector<8x64xf32>, vector<8x16xf32> -> vector<8x80xf32>
    %c0_25 = arith.constant 0 : index
    %c0_26 = arith.constant 0 : index
    %45 = vector.load %arg4[%c0_25, %c0_26] : memref<8x80xf32, #tpu.memory_space<vmem>>, vector<8x80xf32>
    tpu.vector_store %arg4[%c0_25, %c0_26], %44 {strides = array<i32>} : memref<8x80xf32, #tpu.memory_space<vmem>>, vector<8x80xf32>,
    return
  }
  func.func @transform_0(%arg0: i32) -> (i32, i32) {
    %c0_i32 = arith.constant 0 : i32
    %c0_i32_0 = arith.constant 0 : i32
    return %arg0, %c0_i32 : i32, i32
  }
  func.func @transform_1(%arg0: i32) -> (i32, i32) {
    %c0_i32 = arith.constant 0 : i32
    %c0_i32_0 = arith.constant 0 : i32
    return %arg0, %c0_i32 : i32, i32
  }
  func.func @transform_2(%arg0: i32) -> (i32, i32) {
    %c0_i32 = arith.constant 0 : i32
    %c0_i32_0 = arith.constant 0 : i32
    %c0_i32_1 = arith.constant 0 : i32
    return %c0_i32, %c0_i32_0 : i32, i32
  }
  func.func @transform_3(%arg0: i32) -> (i32, i32) {
    %c0_i32 = arith.constant 0 : i32
    %c0_i32_0 = arith.constant 0 : i32
    return %arg0, %c0_i32 : i32, i32
  }
}

</mosaic_0001>

<bundles_post_ra>
// kernel: tpu_custom_call.1
= control target key start
LH: loop header
LB: loop body
LE: loop exit
PB: predicated region body
PF: predicated region fallthrough
CT: control target
= control target key end

     0   :  { %8 = vsyncpa [#allocation3], 0  ;;  %s444_s0 = inlined_call_operand.hbm [shape: f32[8,64], index: 0, kind: input, shape index: {}]   ;;  %s445_s1 = inlined_call_operand.hbm [shape: f32[8,8], index: 1, kind: input, shape index: {}]   ;;  %s446_s2 = inlined_call_operand.hbm [shape: f32[216,128], index: 2, kind: input, shape index: {}]   ;;  %s447_s3 = inlined_call_operand.hbm [shape: f32[8,80], index: 3, kind: output, shape index: {}]  }
   0x1   :  { %9 = vsyncpa [#allocation6], 0  ;;  %s27_s14 = sshll.u32 %s445_s1, 4  ;;  %s28_s14 = int_to_ptr.hbm [resolvable:$true] %s27_s14 }
   0x2   :  { %10 = vsyncpa [#allocation4], 0  ;;  %s396_s15 = smov [#allocation5]   ;;  %s16_s19 = sshll.u32 %s444_s0, 4  ;;  %s17_s19 = int_to_ptr.hbm [resolvable:$true] %s16_s19 }
   0x3   :  { %s29_s16 = sshll.u32 %s396_s15, 4  ;;  %s397_s20 = smov [#allocation2]   ;;  %s30_s16 = int_to_ptr.vmem [resolvable:$true] %s29_s16 }
   0x4   :  { %32 = dma.hbm_to_vmem [thread:$0]  %s28_s14, 128, %s30_s16, [#allocation6]  }
   0x5   :  { %s18_s21 = sshll.u32 %s397_s20, 4  ;;  %s37_s24 = sshll.u32 %s446_s2, 4  ;;  %s19_s21 = int_to_ptr.vmem [resolvable:$true] %s18_s21  ;;  %s38_s24 = int_to_ptr.hbm [resolvable:$true] %s37_s24 }
   0x6   :  { %21 = dma.hbm_to_vmem [thread:$0]  %s17_s19, 128, %s19_s21, [#allocation3]  }
   0x7   :  { %s398_s1 = smov [#allocation7]   ;;  %s399_s26 = smov 128  }
   0x8   :  { %s39_s25 = sshll.u32 %s398_s1, 4  ;;  %s400_s27 = smov 8   ;;  %s40_s25 = int_to_ptr.vmem [resolvable:$true] %s39_s25 }
   0x9   :  { %45 = dma.hbm_to_vmem [thread:$0]  %s38_s24, 3456, %s40_s25, [#allocation6], %s399_s26, %s399_s26, %s400_s27  }
   0xa   :  { %390 = dma.done.wait [#allocation3], 128  }
   0xb   :  { %391 = vsyncadd [#allocation3], 4294967168 }
   0xc   :  { %392 = dma.done.wait [#allocation6], 3584  }
   0xd   :  { %393 = vsyncadd [#allocation6], 4294963712  ;;  %v66_v0 = vld [vmem:[#allocation7 + $0x38] sm:$0xff]  ;;  %v65_v1 = vld [vmem:[#allocation7 + $0x30] sm:$0xff]  ;;  %vm69_vm0 = vcmask 523264   ;;  %vm100_vm1 = vcmask 261120  }
   0xe   :  { %81 = vmatpush.msra.mxu0 %v66_v0  ;;  %v64_v2 = vld [vmem:[#allocation7 + $0x28] sm:$0xff]  ;;  %v63_v3 = vld [vmem:[#allocation7 + $0x20] sm:$0xff]  ;;  %v62_v5 = vld [vmem:[#allocation7 + $0x18] sm:$0xff]  ;;  %vm129_vm2 = vcmask 130048   ;;  %s401_s0 = smov 64   ;;  %s402_s2 = smov 120  }
   0xf   :  { %v97_v4 = vld [vmem:[#allocation7 + $0x60] sm:$0xff]  ;;  %v61_v6 = vld [vmem:[#allocation7 + $0x10] sm:$0xff]  ;;  %v60_v7 = vld [vmem:[#allocation7 + $0x8] sm:$0xff]  ;;  %vm167_vm3 = vcmask 64512   ;;  %s403_s28 = smov [#allocation8]   ;;  %s263_s5 = sshll.u32 %s447_s3, 4  ;;  %s264_s5 = int_to_ptr.hbm [resolvable:$true] %s263_s5 }
  0x10   :  { %82 = vmatpush.msra.mxu0 %v65_v1  ;;  %116 = vmatpush.msra.mxu1 %v97_v4  ;;  %v59_v8 = vld [vmem:[#allocation7] sm:$0xff]  ;;  %v58_v9 = vld [vmem:[#allocation2] sm:$0xff]  ;;  %v96_v10 = vld [vmem:[#allocation7 + $0x58] sm:$0xff]  ;;  %s261_s29 = sshll.u32 %s403_s28, 4  ;;  %vm254_vm4 = vcmask 654336   ;;  %s262_s29 = int_to_ptr.vmem [resolvable:$true] %s261_s29 }
  0x11   :  { %v95_v11 = vld [vmem:[#allocation7 + $0x50] sm:$0xff]  ;;  %v94_v12 = vld [vmem:[#allocation7 + $0x48] sm:$0xff]  ;;  %v288_v13 = vld [vmem:[#allocation7 + $0x40] ss:$0 sm:$0xff] }
  0x12   :  { %83 = vmatpush.msra.mxu0 %v64_v2  ;;  %117 = vmatpush.msra.mxu1 %v96_v10  ;;  %v126_v17 = vld [vmem:[#allocation7 + $0x78] sm:$0xff]  ;;  %v125_v18 = vld [vmem:[#allocation7 + $0x70] sm:$0xff]  ;;  %v289_v20 = vld [vmem:[#allocation7 + $0x68] ss:$0 sm:$0xff] }
  0x13   :  { %147 = vmatpush.msra.mxu2 %v126_v17  ;;  %v153_v19 = vld [vmem:[#allocation5] sm:$0xff]  ;;  %v290_v24 = vld [vmem:[#allocation7 + $0x80] ss:$0 sm:$0xff]  ;;  %v164_v29 = vld [vmem:[#allocation7 + $0x88] sm:$0xff] }
  0x14   :  { %84 = vmatpush.msra.mxu0 %v63_v3  ;;  %118 = vmatpush.msra.mxu1 %v95_v11  ;;  %v193_v30 = vld [vmem:[#allocation7 + $0xa0] sm:$0xff]  ;;  %v192_v33 = vld [vmem:[#allocation7 + $0x98] sm:$0xff]  ;;  %v223_v34 = vld [vmem:[#allocation7 + $0xc8] sm:$0xff] }
  0x15   :  { %148 = vmatpush.msra.mxu2 %v125_v18  ;;  %155 = vrot.lane.b32.xlu0 %v153_v19, %s400_s27  ;;  %v222_v35 = vld [vmem:[#allocation7 + $0xc0] sm:$0xff]  ;;  %v291_v36 = vld [vmem:[#allocation7 + $0x90] ss:$0 sm:$0xff]  ;;  %v221_v40 = vld [vmem:[#allocation7 + $0xb8] sm:$0xff] }
  0x16   :  { %85 = vmatpush.msra.mxu0 %v62_v5  ;;  %119 = vmatpush.msra.mxu1 %v94_v12  ;;  %v220_v41 = vld [vmem:[#allocation7 + $0xb0] sm:$0xff]  ;;  %v292_v42 = vld [vmem:[#allocation7 + $0xa8] ss:$0 sm:$0xff] }
  0x17   :  { %186 = vmatpush.msra.mxu3 %v164_v29  ;;  %241 = vmatpush.msrb.mxu2 %v223_v34  ;;  %v293_v46 = vld [vmem:[#allocation7 + $0xd0] ss:$0 sm:$0xff] }
  0x18   :  { %86 = vmatpush.msra.mxu0 %v61_v6 }
  0x19   :  { %213 = vmatpush.msrb.mxu3 %v193_v30  ;;  %242 = vmatpush.msrb.mxu2 %v222_v35 }
  0x1a   :  { %87 = vmatpush.msra.mxu0 %v60_v7 }
  0x1b   :  { %214 = vmatpush.msrb.mxu3 %v192_v33  ;;  %243 = vmatpush.msrb.mxu2 %v221_v40 }
  0x1c   :  { %88 = vmatpush.msra.mxu0 %v59_v8 }
  0x1d   :  { %274 = vmatmul.msk.f32.vlgmr.msra.gmra.mxu0 %vm69_vm0, %v58_v9  ;;  %244 = vmatpush.msrb.mxu2 %v220_v41 }
  0x87   :  { %v156_v26 = vpop.permute.xlu0 %155 }
  0x9a   :  { %v90_v14 = vpop.f32.mrf.mxu0 }
  0x9b   :  { %v91_v15 = vadd.f32 %v288_v13, %v90_v14 }
  0x9d   :  { %v93_v16 = vmax.f32 %v91_v15, 0.0 }
  0x9f   :  { %275 = vmatmul.msk.f32.vlgmr.msra.gmra.mxu1 %vm100_vm1, %v93_v16 }
 0x11c   :  { %v121_v21 = vpop.f32.mrf.mxu1 }
 0x11d   :  { %v122_v22 = vadd.f32 %v289_v20, %v121_v21 }
 0x11f   :  { %v124_v23 = vmax.f32 %v122_v22, 0.0 }
 0x121   :  { %276 = vmatmul.msk.f32.vlgmr.msra.gmra.mxu2 %vm129_vm2, %v124_v23 }
 0x1a4   :  { %v150_v25 = vpop.f32.mrf.mxu2 }
 0x1a5   :  { %v151_v27 = vadd.f32 %v290_v24, %v150_v25 }
 0x1a7   :  { %v158_v28 = vmul.f32 %v156_v26, %v151_v27  ;;  %250 = vrot.lane.b32.xlu1 %v151_v27, %s401_s0 }
 0x1a9   :  { %160 = vrot.lane.b32.xlu0 %v158_v28, %s402_s2 }
 0x219   :  { %v251_v49 = vpop.permute.xlu1 %250 }
 0x21b   :  { %v161_v31 = vpop.permute.xlu0 %160 }
 0x21c   :  { %v163_v32 = vadd.f32 %v161_v31, %v151_v27 }
 0x21e   :  { %277 = vmatmul.msk.f32.vlgmr.msra.gmra.mxu3 %vm167_vm3, %v163_v32 }
 0x2a1   :  { %v188_v37 = vpop.f32.mrf.mxu3 }
 0x2a2   :  { %v189_v38 = vadd.f32 %v291_v36, %v188_v37 }
 0x2a4   :  { %v191_v39 = vmax.f32 %v189_v38, 0.0 }
 0x2a6   :  { %278 = vmatmul.msk.f32.vlgmr.msrb.gmra.mxu3 %vm129_vm2, %v191_v39 }
 0x329   :  { %v216_v43 = vpop.f32.mrf.mxu3 }
 0x32a   :  { %v217_v44 = vadd.f32 %v292_v42, %v216_v43 }
 0x32c   :  { %v219_v45 = vmax.f32 %v217_v44, 0.0 }
 0x32e   :  { %279 = vmatmul.msk.f32.vlgmr.msrb.gmra.mxu2 %vm100_vm1, %v219_v45 }
 0x3b1   :  { %v246_v47 = vpop.f32.mrf.mxu2 }
 0x3b2   :  { %v247_v48 = vadd.f32 %v293_v46, %v246_v47 }
 0x3b4   :  { %v253_v50 = vsel %vm69_vm0, %v247_v48, %v251_v49 }
 0x3b5   :  { %255 = vst.msk [vmem:[#allocation8] sm:$0xff] %vm254_vm4, %v253_v50 }
 0x3b6   :  { %266 = dma.vmem_to_hbm [thread:$0]  %s262_s29, 128, %s264_s5, [#allocation4]  }
 0x3b7   :  { %394 = dma.done.wait [#allocation4], 128  }
 0x3b8   :  { %395 = vsyncadd [#allocation4], 4294967168 }
 0x3b9   :  { %271 = vsyncpa [#allocation3], 1 }
 0x3ba   :  { %272 = vsyncpa [#allocation6], 1 }
 0x3bb   :  { %273 = vsyncpa [#allocation4], 1 }

</bundles_post_ra>
